<compile_context>
chip_gen: v6e
topology: v6e:2x2x1
jax: 0.10.0
libtpu: 0.0.40
codegen_flags: <defaults>
</compile_context>

<pallas_src>
import jax
import jax.numpy as jnp
from jax.experimental import pallas as pl
from jax.experimental.pallas import tpu as pltpu

# ---------------- problem sizes (small, consistent with the module) ----------------
N_Q = 6            # joint configuration dim (e.g. 2 segments x 3 config vars)
NUM_SENSORS = 8    # robot_kinematics.num_sensors
N_XI = 4           # per-sensor kinematic feature dim
HIDDEN = 32        # MLP hidden width

# packed parameter slab: every block starts at lane 0 with an 8-aligned sublane offset
SLAB_LANES = 128
ROW_WK, ROW_PHASE, ROW_B3 = 0, 8, 16
ROW_W1, ROW_W2 = 24, 56
ROW_B1, ROW_B2, ROW_W3 = 88, 120, 152
SLAB_ROWS = 184                      # ~92 KiB f32; resident across grid steps

MAX_B_TILE = 4096                    # configs (lanes) per grid step in the batched path

# static per-config cost (for pl.CostEstimate)
_FLOPS_PER_CFG = (2 * N_XI * N_Q
                  + NUM_SENSORS * (2 * HIDDEN * N_XI + 2 * HIDDEN * HIDDEN + 2 * HIDDEN))
_TRANS_PER_CFG = NUM_SENSORS * (N_XI + 2 * HIDDEN)


# ---------------- parameter packing (done ONCE at parameter-load time) ----------------
def pack_params(params):
    """Coalesce all parameters into one (8,128)-aligned f32 slab (2 DMAs per forward)."""
    slab = jnp.zeros((SLAB_ROWS, SLAB_LANES), jnp.float32)
    slab = slab.at[ROW_WK:ROW_WK + N_XI, 0:N_Q].set(params["wk"].T.astype(jnp.float32))
    slab = slab.at[ROW_PHASE:ROW_PHASE + N_XI, 0:NUM_SENSORS].set(
        params["phase"].T.astype(jnp.float32))
    slab = slab.at[ROW_B3:ROW_B3 + 1, 0:1].set(params["b3"].astype(jnp.float32))
    slab = slab.at[ROW_W1:ROW_W1 + HIDDEN, 0:N_XI].set(params["w1"].T.astype(jnp.float32))
    slab = slab.at[ROW_W2:ROW_W2 + HIDDEN, 0:HIDDEN].set(params["w2"].T.astype(jnp.float32))
    slab = slab.at[ROW_B1:ROW_B1 + HIDDEN, 0:1].set(params["b1"].T.astype(jnp.float32))
    slab = slab.at[ROW_B2:ROW_B2 + HIDDEN, 0:1].set(params["b2"].T.astype(jnp.float32))
    slab = slab.at[ROW_W3:ROW_W3 + HIDDEN, 0:1].set(params["w3"].astype(jnp.float32))
    return slab


def _unpack_slab(slab_ref):
    """Static, lane-0 / 8-aligned slices of the packed parameter slab (weights transposed)."""
    wkT    = slab_ref[ROW_WK:ROW_WK + N_XI, 0:N_Q]                  # (N_XI, N_Q)
    phaseT = slab_ref[ROW_PHASE:ROW_PHASE + N_XI, 0:NUM_SENSORS]    # (N_XI, NUM_SENSORS)
    b3     = slab_ref[ROW_B3:ROW_B3 + 1, 0:1]                       # (1, 1)
    w1T    = slab_ref[ROW_W1:ROW_W1 + HIDDEN, 0:N_XI]               # (HIDDEN, N_XI)
    w2T    = slab_ref[ROW_W2:ROW_W2 + HIDDEN, 0:HIDDEN]             # (HIDDEN, HIDDEN)
    b1T    = slab_ref[ROW_B1:ROW_B1 + HIDDEN, 0:1]                  # (HIDDEN, 1)
    b2T    = slab_ref[ROW_B2:ROW_B2 + HIDDEN, 0:1]                  # (HIDDEN, 1)
    w3c    = slab_ref[ROW_W3:ROW_W3 + HIDDEN, 0:1]                  # (HIDDEN, 1)
    return wkT, phaseT, b3, w1T, w2T, b1T, b2T, w3c


# ---------------- kernels ----------------
def _predict_single_kernel(q_ref, slab_ref, u_ref):
    """Fused kinematics-feature + shared-MLP forward for one configuration.

    q_ref:    (1, N_Q)           joint configuration (row vector)
    slab_ref: (SLAB_ROWS, 128)   packed parameters
    u_ref:    (1, NUM_SENSORS)   lane-dense output: one measurement per sensor
    """
    wkT, phaseT, b3, w1T, w2T, b1T, b2T, w3c = _unpack_slab(slab_ref)
    q = q_ref[...]                                                     # (1, N_Q)

    # kinematics mix q @ Wk as VPU multiply + lane reduce (keeps the M=1 op off the MXU)
    zT = jnp.sum(wkT * q, axis=-1, keepdims=True)                      # (N_XI, 1)
    xiT = jnp.sin(zT + phaseT)                                         # (N_XI, NUM_SENSORS)

    h1T = jnp.tanh(jnp.dot(w1T, xiT, preferred_element_type=jnp.float32) + b1T)   # (H, NS)
    h2T = jnp.tanh(jnp.dot(w2T, h1T, preferred_element_type=jnp.float32) + b2T)   # (H, NS)

    # scalar head as VPU multiply + sublane reduce (no N=1 MXU op), lane-dense store
    u_ref[...] = jnp.sum(h2T * w3c, axis=0, keepdims=True) + b3        # (1, NUM_SENSORS)


def _predict_batched_kernel(qT_ref, slab_ref, u_ref):
    """Forward over a tile of B_TILE configurations; sensor dim unrolled in-kernel.

    qT_ref:  (N_Q, B_TILE)          configs on lanes, q-dims on sublanes (no replication)
    slab_ref:(SLAB_ROWS, 128)       packed parameters, resident across grid steps
    u_ref:   (NUM_SENSORS, B_TILE)  full (8, B_TILE) lane-dense output tile
    """
    wkT, phaseT, b3, w1T, w2T, b1T, b2T, w3c = _unpack_slab(slab_ref)
    qT = qT_ref[...]                                                   # (N_Q, TILE)

    zT = jnp.dot(wkT, qT, preferred_element_type=jnp.float32)          # (N_XI, TILE)
    b3s = b3[0, 0]

    # Sensors share the same z; only the phase offset differs -> unrolled in-kernel loop,
    # so Q is never replicated in HBM and the per-sensor phase comes from the resident slab.
    for s in range(NUM_SENSORS):
        xiT = jnp.sin(zT + phaseT[:, s:s + 1])                                         # (N_XI, TILE)
        h1T = jnp.tanh(jnp.dot(w1T, xiT, preferred_element_type=jnp.float32) + b1T)    # (H, TILE)
        h2T = jnp.tanh(jnp.dot(w2T, h1T, preferred_element_type=jnp.float32) + b2T)    # (H, TILE)
        u_ref[s:s + 1, :] = jnp.sum(h2T * w3c, axis=0, keepdims=True) + b3s            # (1, TILE)


# ---------------- entry points ----------------
@jax.jit
def sensor_measurement_predictor(q, slab):
    """q: (N_Q,) f32, slab: pre-packed params -> u: (NUM_SENSORS,) f32 (module's forward)."""
    q2d = q.reshape(1, N_Q).astype(jnp.float32)
    vmem = pl.BlockSpec(memory_space=pltpu.MemorySpace.VMEM)
    out = pl.pallas_call(
        _predict_single_kernel,
        out_shape=jax.ShapeDtypeStruct((1, NUM_SENSORS), jnp.float32),
        in_specs=[vmem, vmem],
        out_specs=vmem,
    )(q2d, slab)
    return out[0]


def _batched_tiling(batch):
    """Pick a 128-aligned lane tile: large (amortize ~600-cycle step overhead) but >=2
    grid steps when there is enough work, so v7x shards across both TensorCores."""
    b128 = ((batch + 127) // 128) * 128
    if b128 <= 128:
        tile = b128
    else:
        half = (b128 + 1) // 2
        tile = min(MAX_B_TILE, ((half + 127) // 128) * 128)
    b_pad = ((b128 + tile - 1) // tile) * tile
    return tile, b_pad


@jax.jit
def sensor_measurement_predictor_batched(Q, slab):
    """Q: (B, N_Q), slab: pre-packed params -> U: (B, NUM_SENSORS); forward per row."""
    B = Q.shape[0]
    tile, b_pad = _batched_tiling(B)
    grid = b_pad // tile

    # Pad (no hard assert) and transpose so configs sit on lanes; this is tiny layout
    # plumbing (B x 6 floats), not replication.
    Qp = jnp.zeros((b_pad, N_Q), jnp.float32).at[:B].set(Q.astype(jnp.float32))
    qT = Qp.T                                                       # (N_Q, b_pad)

    bytes_accessed = 4 * (N_Q * b_pad + SLAB_ROWS * SLAB_LANES + NUM_SENSORS * b_pad)
    out = pl.pallas_call(
        _predict_batched_kernel,
        out_shape=jax.ShapeDtypeStruct((NUM_SENSORS, b_pad), jnp.float32),
        grid=(grid,),
        in_specs=[
            pl.BlockSpec((N_Q, tile), lambda i: (0, i)),
            pl.BlockSpec((SLAB_ROWS, SLAB_LANES), lambda i: (0, 0)),   # weights resident
        ],
        out_specs=pl.BlockSpec((NUM_SENSORS, tile), lambda i: (0, i)),
        compiler_params=pltpu.CompilerParams(
            dimension_semantics=("parallel",)),                        # both TCs on v7x
        cost_estimate=pl.CostEstimate(
            flops=_FLOPS_PER_CFG * b_pad,
            transcendentals=_TRANS_PER_CFG * b_pad,
            bytes_accessed=bytes_accessed),
    )(qT, slab)
    return out[:, :B].T                                                # (B, NUM_SENSORS)


# ---------------- parameters & pure-JAX reference ----------------
def init_params(key):
    ks = jax.random.split(key, 8)
    scale = 0.5
    return {
        "wk":    scale * jax.random.normal(ks[0], (N_Q, N_XI), jnp.float32),
        "phase": scale * jax.random.normal(ks[1], (NUM_SENSORS, N_XI), jnp.float32),
        "w1":    scale * jax.random.normal(ks[2], (N_XI, HIDDEN), jnp.float32),
        "b1":    scale * jax.random.normal(ks[3], (1, HIDDEN), jnp.float32),
        "w2":    scale * jax.random.normal(ks[4], (HIDDEN, HIDDEN), jnp.float32) / jnp.sqrt(HIDDEN),
        "b2":    scale * jax.random.normal(ks[5], (1, HIDDEN), jnp.float32),
        "w3":    scale * jax.random.normal(ks[6], (HIDDEN, 1), jnp.float32) / jnp.sqrt(HIDDEN),
        "b3":    scale * jax.random.normal(ks[7], (1, 1), jnp.float32),
    }


def _reference(q, p):
    """Pure-JAX reference of the same forward."""
    z = q.reshape(1, N_Q) @ p["wk"]
    xi = jnp.sin(z + p["phase"])
    h1 = jnp.tanh(xi @ p["w1"] + p["b1"])
    h2 = jnp.tanh(h1 @ p["w2"] + p["b2"])
    return (h2 @ p["w3"] + p["b3"])[:, 0]


if __name__ == "__main__":
    key = jax.random.PRNGKey(0)
    kq, kp, kb = jax.random.split(key, 3)
    params = init_params(kp)
    # Packed ONCE at parameter-load time (hoisted out of the per-call jitted entry points).
    slab = jax.block_until_ready(pack_params(params))

    # ---- single configuration (module's forward signature) ----
    q = jax.random.normal(kq, (N_Q,), jnp.float32)
    u = jax.block_until_ready(sensor_measurement_predictor(q, slab))
    u_ref = _reference(q, params)
    assert u.shape == (NUM_SENSORS,)
    assert jnp.allclose(u, u_ref, atol=1e-4, rtol=1e-4), (u, u_ref)

    # ---- batched configurations (padding + multi-step "parallel" grid exercised) ----
    B = 200   # not a multiple of the lane tile -> tests pad/slice path; 2 grid steps
    Qb = jax.random.normal(kb, (B, N_Q), jnp.float32)
    Ub = jax.block_until_ready(sensor_measurement_predictor_batched(Qb, slab))
    Ub_ref = jax.vmap(lambda qq: _reference(qq, params))(Qb)
    assert Ub.shape == (B, NUM_SENSORS)
    assert jnp.allclose(Ub, Ub_ref, atol=1e-4, rtol=1e-4)

    print("KERNEL_OK")
</pallas_src>

<mosaic_0001>
module attributes {stable_mosaic.version = 11 : i64} {
  func.func @_predict_single_kernel(%arg0: memref<1x6xf32, #tpu.memory_space<vmem>>, %arg1: memref<184x128xf32, #tpu.memory_space<vmem>>, %arg2: memref<1x8xf32, #tpu.memory_space<vmem>>) attributes {dimension_semantics = [], scalar_prefetch = 0 : i64, scratch_operands = 0 : i64, tpu.core_type = #tpu.core_type<tc>} {
    %c0 = arith.constant 0 : index
    %c0_0 = arith.constant 0 : index
    %0 = vector.load %arg1[%c0, %c0_0] : memref<184x128xf32, #tpu.memory_space<vmem>>, vector<4x6xf32>
    %c8 = arith.constant 8 : index
    %c0_1 = arith.constant 0 : index
    %1 = vector.load %arg1[%c8, %c0_1] : memref<184x128xf32, #tpu.memory_space<vmem>>, vector<4x8xf32>
    %c16 = arith.constant 16 : index
    %c0_2 = arith.constant 0 : index
    %2 = vector.load %arg1[%c16, %c0_2] : memref<184x128xf32, #tpu.memory_space<vmem>>, vector<1x1xf32>
    %c24 = arith.constant 24 : index
    %c0_3 = arith.constant 0 : index
    %3 = vector.load %arg1[%c24, %c0_3] : memref<184x128xf32, #tpu.memory_space<vmem>>, vector<32x4xf32>
    %c56 = arith.constant 56 : index
    %c0_4 = arith.constant 0 : index
    %4 = vector.load %arg1[%c56, %c0_4] : memref<184x128xf32, #tpu.memory_space<vmem>>, vector<32x32xf32>
    %c88 = arith.constant 88 : index
    %c0_5 = arith.constant 0 : index
    %5 = vector.load %arg1[%c88, %c0_5] : memref<184x128xf32, #tpu.memory_space<vmem>>, vector<32x1xf32>
    %c120 = arith.constant 120 : index
    %c0_6 = arith.constant 0 : index
    %6 = vector.load %arg1[%c120, %c0_6] : memref<184x128xf32, #tpu.memory_space<vmem>>, vector<32x1xf32>
    %c152 = arith.constant 152 : index
    %c0_7 = arith.constant 0 : index
    %7 = vector.load %arg1[%c152, %c0_7] : memref<184x128xf32, #tpu.memory_space<vmem>>, vector<32x1xf32>
    %c0_8 = arith.constant 0 : index
    %c0_9 = arith.constant 0 : index
    %8 = vector.load %arg0[%c0_8, %c0_9] : memref<1x6xf32, #tpu.memory_space<vmem>>, vector<1x6xf32>
    %9 = vector.broadcast %8 : vector<1x6xf32> to vector<4x6xf32>
    %10 = arith.mulf %0, %9 : vector<4x6xf32>
    %cst = arith.constant dense<0.000000e+00> : vector<4xf32>
    %11 = vector.multi_reduction <add>, %10, %cst [1] : vector<4x6xf32> to vector<4xf32>
    %12 = vector.shape_cast %11 : vector<4xf32> to vector<4x1xf32>
    %13 = vector.broadcast %12 : vector<4x1xf32> to vector<4x8xf32>
    %14 = arith.addf %13, %1 : vector<4x8xf32>
    %15 = math.sin %14 : vector<4x8xf32>
    %cst_10 = arith.constant dense<0.000000e+00> : vector<32x8xf32>
    %16 = tpu.matmul %3, %15, %cst_10 {dimension_numbers = #tpu.dot_dimension_numbers<[1], [0], [0], [1], [0, 0, 1, 1], [], []>} : vector<32x4xf32>, vector<4x8xf32>, vector<32x8xf32> -> vector<32x8xf32>
    %17 = vector.broadcast %5 : vector<32x1xf32> to vector<32x8xf32>
    %18 = arith.addf %16, %17 : vector<32x8xf32>
    %19 = math.tanh %18 : vector<32x8xf32>
    %cst_11 = arith.constant dense<0.000000e+00> : vector<32x8xf32>
    %20 = tpu.matmul %4, %19, %cst_11 {dimension_numbers = #tpu.dot_dimension_numbers<[1], [0], [0], [1], [0, 0, 1, 1], [], []>} : vector<32x32xf32>, vector<32x8xf32>, vector<32x8xf32> -> vector<32x8xf32>
    %21 = vector.broadcast %6 : vector<32x1xf32> to vector<32x8xf32>
    %22 = arith.addf %20, %21 : vector<32x8xf32>
    %23 = math.tanh %22 : vector<32x8xf32>
    %24 = vector.broadcast %7 : vector<32x1xf32> to vector<32x8xf32>
    %25 = arith.mulf %23, %24 : vector<32x8xf32>
    %cst_12 = arith.constant dense<0.000000e+00> : vector<8xf32>
    %26 = vector.multi_reduction <add>, %25, %cst_12 [0] : vector<32x8xf32> to vector<8xf32>
    %27 = vector.shape_cast %26 : vector<8xf32> to vector<1x8xf32>
    %28 = vector.broadcast %2 : vector<1x1xf32> to vector<1x8xf32>
    %29 = arith.addf %27, %28 : vector<1x8xf32>
    %c0_13 = arith.constant 0 : index
    %c0_14 = arith.constant 0 : index
    %30 = vector.load %arg2[%c0_13, %c0_14] : memref<1x8xf32, #tpu.memory_space<vmem>>, vector<1x8xf32>
    tpu.vector_store %arg2[%c0_13, %c0_14], %29 {strides = array<i32>} : memref<1x8xf32, #tpu.memory_space<vmem>>, vector<1x8xf32>,
    return
  }
}

</mosaic_0001>

<bundles_post_ra>
// kernel: sensor_measurement_predictor.1
= control target key start
LH: loop header
LB: loop body
LE: loop exit
PB: predicated region body
PF: predicated region fallthrough
CT: control target
= control target key end

     0   :  { %7 = vsyncpa [#allocation3], 0  ;;  %s677_s0 = inlined_call_operand.vmem [shape: f32[1,6], index: 0, kind: input, shape index: {}]   ;;  %s678_s1 = inlined_call_operand.hbm [shape: f32[184,128], index: 1, kind: input, shape index: {}]   ;;  %s679_s2 = inlined_call_operand.hbm [shape: f32[1,8], index: 2, kind: output, shape index: {}]  }
   0x1   :  { %8 = vsyncpa [#allocation4], 0  ;;  %s613_s9 = smov [#allocation2]  }
   0x2   :  { %s16_s10 = sshll.u32 %s613_s9, 4  ;;  %s17_s10 = int_to_ptr.vmem [resolvable:$true] %s16_s10 }
   0x3   :  { %s577_s11 = scalar_lea.vmem %s17_s10, 2944  ;;  %p582_p1 = scmp.lt.s32.totalorder %s17_s10, %s17_s10 }
   0x4   :  { %p578_p0 = scmp.ne.s32.totalorder %s17_s10, %s577_s11  ;;  %p583_p2 = scmp.lt.s32.totalorder %s577_s11, %s577_s11 }
   0x6   :  { %p584_p3 = por %p583_p2, %p582_p1 }
   0x8   :  { %p585_p4 = pnand %p584_p3, %p578_p0 }
   0xa   :  { %588 = shalt.err (!%p585_p4)
}
   0xb   :  { %s614_s12 = smov 128   ;;  %s615_s13 = smov 8  }
   0xc   :  { %22 = dma.hbm_to_vmem [thread:$0]  %s678_s1, 2944, %s17_s10, [#allocation3], %s614_s12, %s614_s12, %s615_s13  }
   0xd   :  { %609 = dma.done.wait [#allocation3], 2944  }
   0xe   :  { %610 = vsyncadd [#allocation3], 4294964352  ;;  %v26_v0 = vld [vmem:[#allocation2] sm:$0xf]  ;;  %vm57_vm0 = vcmask 44032   ;;  %v29_v4 = vld [vmem:[#allocation2 + $0x18] sm:$0xff] }
   0xf   :  { %v475_v1 = vld [vmem:[%s677_s0] ss:$0 sm:$0xff]  ;;  %vm186_vm1 = vcmask 31744   ;;  %v39_v5 = vld [vmem:[#allocation2 + $0x68] sm:$0xff]  ;;  %v616_v6 = vmov 0   ;;  %v40_v8 = vld [vmem:[#allocation2 + $0x70] sm:$0xff] }
  0x10   :  { %v56_v2 = vmul.f32 %v475_v1, %v26_v0  ;;  %504 = vmatprep.mubr.msk.f32.mxu0 %vm186_vm1, %v29_v4  ;;  %548 = vset.pattern.permute.xlu1 %v616_v6  ;;  %v38_v7 = vld [vmem:[#allocation2 + $0x60] sm:$0xff]  ;;  %v37_v9 = vld [vmem:[#allocation2 + $0x58] sm:$0xff]  ;;  %v43_v12 = vld [vmem:[#allocation2 + $0x88] sm:$0xff]  ;;  %v617_v33 = vmov 2102212464   ;;  %vm199_vm14 = vcmask 1043456  }
  0x11   :  { %547 = vset.pattern.permute.xlu0 %v616_v6  ;;  %178 = vperm.xlu1 %548, %v39_v5   ;;  %v41_v10 = vld [vmem:[#allocation2 + $0x78] sm:$0xff]  ;;  %v42_v11 = vld [vmem:[#allocation2 + $0x80] sm:$0xff]  ;;  %v44_v13 = vld [vmem:[#allocation2 + $0x90] sm:$0xff]  ;;  %v618_v35 = vmov 920167782   ;;  %s623_s0 = smov [#allocation5]  }
  0x12   :  { %v58_v3 = vsel %vm57_vm0, %v56_v2, 0.0  ;;  %v45_v14 = vld [vmem:[#allocation2 + $0x98] sm:$0xff]  ;;  %v46_v15 = vld [vmem:[#allocation2 + $0xa0] sm:$0xff]  ;;  %v27_v16 = vld [vmem:[#allocation2 + $0x8] sm:$0xf]  ;;  %vm312_vm0 = vcmask 261120  }
  0x13   :  { %59 = vadd.xlane.f32.xlu0 %v58_v3  ;;  %v47_v18 = vld [vmem:[#allocation2 + $0xa8] sm:$0xff]  ;;  %v48_v22 = vld [vmem:[#allocation2 + $0xb0] sm:$0xff]  ;;  %v619_v39 = vmov 1326507024   ;;  %v620_v41 = vmov 683565275  }
  0x14   :  { %v28_v26 = vld [vmem:[#allocation2 + $0x10] sm:$0x1]  ;;  %v621_v43 = vmov 2475754826   ;;  %v622_v46 = vmov 2131351028  }
  0x15   :  { %173 = vperm.xlu1 %548, %v38_v7   ;;  %s466_s1 = sshll.u32 %s623_s0, 4  ;;  %s467_s1 = int_to_ptr.vmem [resolvable:$true] %s466_s1 }
  0x16   :  { %s589_s18 = scalar_lea.vmem %s467_s1, 16  ;;  %s593_s19 = scalar_lea.vmem %s467_s1, 32 }
  0x17   :  { %p590_p5 = scmp.ne.s32.totalorder %s467_s1, %s589_s18  ;;  %p594_p6 = scmp.lt.s32.totalorder %s467_s1, %s467_s1 }
  0x18   :  { %p595_p7 = scmp.lt.s32.totalorder %s593_s19, %s589_s18 }
  0x19   :  { %168 = vperm.xlu1 %548, %v37_v9  }
  0x1a   :  { %p596_p8 = por %p595_p7, %p594_p6 }
  0x1c   :  { %p597_p9 = pnand %p596_p8, %p590_p5 }
  0x1d   :  { %294 = vperm.xlu1 %548, %v41_v10  }
  0x21   :  { %299 = vperm.xlu1 %548, %v42_v11  }
  0x25   :  { %304 = vperm.xlu1 %548, %v43_v12  }
  0x29   :  { %183 = vperm.xlu0 %547, %v40_v8   ;;  %309 = vperm.xlu1 %548, %v44_v13  }
  0x2d   :  { %416 = vperm.xlu1 %548, %v45_v14  }
  0x31   :  { %421 = vperm.xlu1 %548, %v46_v15  }
  0x35   :  { %426 = vperm.xlu1 %548, %v47_v18  }
  0x39   :  { %431 = vperm.xlu1 %548, %v48_v22  }
  0x3d   :  { %454 = vperm.xlu1 %548, %v28_v26  }
  0x9c   :  { %v60_v17 = vpop.xlane.xlu0 %59 }
  0x9d   :  { %v646_v19 = vadd.f32 %v60_v17, %v27_v16 }
  0x9f   :  { %v65_v20 = vand.u32 2139095040, %v646_v19  ;;  %v62_v21 = vand.u32 2147483647, %v646_v19  ;;  %vm64_vm9 = vcmp.lt.s32.totalorder %v646_v19, 0  ;;  %vm154_vm15 = vweird.f32 %v646_v19 }
  0xa1   :  { %v66_v23 = vshrl.u32 %v65_v20, 23  ;;  %v69_v25 = vand.u32 8388607, %v62_v21  ;;  %vm63_vm10 = vcmp.le.f32.partialorder %v62_v21, 0.7853982 }
  0xa3   :  { %v476_v24 = vadd.s32 4294967169, %v66_v23  ;;  %v70_v29 = vor.u32 8388608, %v69_v25 }
  0xa5   :  { %v72_v27 = vadd.s32 1, %v476_v24  ;;  %v110_v37 = vshll.u32 %v70_v29, 8 }
  0xa7   :  { %vm73_vm2 = vcmp.gt.s32.totalorder %v72_v27, 0 }
  0xa8   :  { %v74_v28 = vsel %vm73_vm2, %v72_v27, 0  ;;  %vm458_vm2 = vcmask 57344  }
  0xa9   :  { %v76_v30 = vand.u32 31, %v74_v28  ;;  %v75_v31 = vshrl.u32 %v74_v28, 5 }
  0xab   :  { %v77_v32 = vsub.s32 32, %v76_v30  ;;  %v88_v34 = vshll.u32 %v617_v33, %v76_v30  ;;  %v91_v36 = vshll.u32 %v618_v35, %v76_v30  ;;  %v79_v42 = vshll.u32 %v620_v41, %v76_v30 }
  0xac   :  { %v82_v45 = vshll.u32 %v621_v43, %v76_v30  ;;  %v85_v48 = vshll.u32 %v622_v46, %v76_v30  ;;  %vm97_vm3 = vcmp.lt.s32.totalorder %v75_v31, 4  ;;  %vm94_vm4 = vcmp.lt.s32.totalorder %v75_v31, 1 }
  0xad   :  { %v89_v38 = vshrl.u32 %v618_v35, %v77_v32  ;;  %v92_v40 = vshrl.u32 %v619_v39, %v77_v32  ;;  %v80_v44 = vshrl.u32 %v621_v43, %v77_v32  ;;  %v83_v47 = vshrl.u32 %v622_v46, %v77_v32 }
  0xae   :  { %v86_v49 = vshrl.u32 %v617_v33, %v77_v32  ;;  %v78_v53 = vshrl.u32 %v620_v41, %v77_v32  ;;  %vm95_vm5 = vcmp.lt.s32.totalorder %v75_v31, 2  ;;  %vm96_vm6 = vcmp.lt.s32.totalorder %v75_v31, 3 }
  0xaf   :  { %v90_v50 = vor.u32 %v89_v38, %v88_v34  ;;  %v93_v51 = vor.u32 %v92_v40, %v91_v36  ;;  %v81_v52 = vor.u32 %v80_v44, %v79_v42  ;;  %v84_v54 = vor.u32 %v83_v47, %v82_v45 }
  0xb0   :  { %v87_v55 = vor.u32 %v86_v49, %v85_v48 }
  0xb1   :  { %v103_v56 = vsel %vm97_vm3, %v90_v50, 920167782  ;;  %v107_v57 = vsel %vm97_vm3, %v93_v51, 1326507024  ;;  %v102_v59 = vsel %vm94_vm4, %v81_v52, %v84_v54  ;;  %v98_v62 = vsel %vm94_vm4, %v78_v53, %v81_v52  ;;  %v31_v51 = vld [vmem:[#allocation2 + $0x28] sm:$0xff]  ;;  %v32_v52 = vld [vmem:[#allocation2 + $0x30] sm:$0xff] }
  0xb2   :  { %v99_v58 = vsel %vm97_vm3, %v87_v55, 2102212464  ;;  %v104_v60 = vsel %vm96_vm6, %v87_v55, %v103_v56  ;;  %v106_v61 = vsel %vm94_vm4, %v84_v54, %v87_v55  ;;  %v108_v1 = vsel %vm96_vm6, %v90_v50, %v107_v57  ;;  %v30_v50 = vld [vmem:[#allocation2 + $0x20] sm:$0xff]  ;;  %v33_v53 = vld [vmem:[#allocation2 + $0x38] sm:$0xff] }
  0xb3   :  { %v100_v63 = vsel %vm96_vm6, %v84_v54, %v99_v58  ;;  %v105_v0 = vsel %vm95_vm5, %v102_v59, %v104_v60  ;;  %v109_v2 = vsel %vm95_vm5, %v106_v61, %v108_v1  ;;  %v35_v54 = vld [vmem:[#allocation2 + $0x48] sm:$0xff]  ;;  %v184_v58 = vpop.permute.xlu0 %183 }
  0xb4   :  { %v652_v3 = vmul.u32.u64.low %v110_v37, %v105_v0  ;;  %v653_v4 = vmul.u32.u64.high %v110_v37, %v105_v0, %v652_v3  ;;  %v655_v5 = vmul.u32.u64.low %v110_v37, %v109_v2  ;;  %v656_v6 = vmul.u32.u64.high %v110_v37, %v109_v2, %v655_v5  ;;  %521 = vmatprep.mubr.msk.f32.mxu1 %vm312_vm0, %v35_v54 }
  0xb5   :  { %v101_v7 = vsel %vm95_vm5, %v98_v62, %v100_v63 }
  0xb6   :  { %v120_v8 = vadd.s32 1, %v653_v4  ;;  %v117_v9 = vmul.u32 %v110_v37, %v101_v7  ;;  %vm119_vm7 = vc.u32 %v656_v6, %v652_v3  ;;  %v118_v23 = vadd.s32 %v652_v3, %v656_v6  ;;  %v34_v6 = vld [vmem:[#allocation2 + $0x40] sm:$0xff]  ;;  %v36_v7 = vld [vmem:[#allocation2 + $0x50] sm:$0xff] }
  0xb8   :  { %v121_v10 = vsel %vm119_vm7, %v120_v8, %v653_v4 }
  0xb9   :  { %v122_v11 = vadd.s32 %v121_v10, %v117_v9 }
  0xbb   :  { %v123_v12 = vadd.s32 536870912, %v122_v11 }
  0xbd   :  { %v124_v13 = vshrl.u32 %v123_v12, 30 }
  0xbf   :  { %v125_v14 = vshll.u32 %v124_v13, 30  ;;  %v148_v36 = vsub.s32 4, %v124_v13 }
  0xc1   :  { %v126_v15 = vsub.s32 %v122_v11, %v125_v14  ;;  %v149_v39 = vsel %vm64_vm9, %v148_v36, %v124_v13 }
  0xc2   :  { %v151_v40 = vsel %vm63_vm10, 0, %v149_v39 }
  0xc3   :  { %v128_v16 = vsub.s32 0, %v126_v15  ;;  %v155_v41 = vadd.s32 3, %v151_v40 }
  0xc5   :  { %v477_v17 = vmin.u32 %v128_v16, %v126_v15  ;;  %v156_v42 = vand.u32 3, %v155_v41 }
  0xc7   :  { %v130_v18 = vclz %v477_v17  ;;  %vm161_vm11 = vcmp.eq.s32.totalorder %v156_v42, 2  ;;  %vm158_vm12 = vcmp.eq.s32.totalorder %v156_v42, 0  ;;  %vm157_vm13 = vcmp.lt.s32.totalorder %v156_v42, 2 }
  0xc9   :  { %v478_v20 = vadd.s32 4294967294, %v130_v18 }
  0xcb   :  { %vm479_vm8 = vcmp.lt.s32.totalorder %v478_v20, 0 }
  0xcc   :  { %v133_v22 = vsel %vm479_vm8, 0, %v478_v20 }
  0xcd   :  { %v134_v24 = vsub.s32 32, %v133_v22  ;;  %v138_v25 = vsub.s32 4294967266, %v133_v22  ;;  %v135_v26 = vshll.u32 %v126_v15, %v133_v22 }
  0xcf   :  { %v136_v27 = vshrl.u32 %v118_v23, %v134_v24  ;;  %v139_v28 = vadd.s32 127, %v138_v25 }
  0xd1   :  { %v137_v29 = vor.u32 %v136_v27, %v135_v26  ;;  %v140_v30 = vshll.u32 %v139_v28, 23 }
  0xd3   :  { %v141_v31 = vor.u32 4788187, %v140_v30  ;;  %v144_v33 = vcvt.s32.f32 %v137_v29 }
  0xd5   :  { %v142_v32 = vand.u32 2147483647, %v141_v31 }
  0xd7   :  { %v145_v34 = vmul.f32 %v144_v33, %v142_v32 }
  0xd9   :  { %v146_v35 = vxor.u32 2147483648, %v145_v34 }
  0xdb   :  { %v147_v37 = vsel %vm64_vm9, %v146_v35, %v145_v34 }
  0xdc   :  { %v150_v38 = vsel %vm63_vm10, %v646_v19, %v147_v37  ;;  %v179_v19 = vpop.permute.xlu1 %178 }
  0xdd   :  { %549 = vcosq.f32 %v150_v38 }
  0xde   :  { %551 = vsinq.f32 %v150_v38 }
  0xe0   :  { %v174_v56 = vpop.permute.xlu1 %173 }
  0xe4   :  { %v169_v0 = vpop.permute.xlu1 %168 }
  0xe8   :  { %v295_v8 = vpop.permute.xlu1 %294 }
  0xea   :  { %v550_v43 = vpop.eup %549 }
  0xeb   :  { %v552_v44 = vpop.eup %551  ;;  %v162_v45 = vxor.u32 2147483648, %v550_v43 }
  0xec   :  { %v159_v46 = vxor.u32 2147483648, %v552_v44  ;;  %v300_v9 = vpop.permute.xlu1 %299 }
  0xed   :  { %v163_v47 = vsel %vm161_vm11, %v162_v45, %v552_v44 }
  0xee   :  { %v160_v48 = vsel %vm158_vm12, %v550_v43, %v159_v46 }
  0xef   :  { %v164_v21 = vsel %vm157_vm13, %v160_v48, %v163_v47 }
  0xf0   :  { %v165_v49 = vsel %vm154_vm15, nan, %v164_v21  ;;  %v305_v10 = vpop.permute.xlu1 %304 }
  0xf1   :  { %502 = vmatprep.subr.msk.mxu0 %vm199_vm14, %v165_v49 }
  0xf2   :  { %503 = vmatpush3.msk.msra.mxu0 %vm199_vm14, %v165_v49 }
  0xf3   :  { %505 = vmatmul.mubr.msk.f32.vlgmr.msra.gmra.mxu0 %vm186_vm1, %v30_v50 }
  0xf4   :  { %507 = vmatprep.mubr.msk.f32.mxu0 %vm186_vm1, %v31_v51  ;;  %v310_v11 = vpop.permute.xlu1 %309 }
  0xf7   :  { %508 = vmatmul.mubr.msk.f32.gmra.mxu0 %vm186_vm1, %v32_v52  ;;  %vm438_vm1 = vcmask 64512  }
  0xf8   :  { %518 = vmatprep.mubr.msk.f32.mxu0 %vm312_vm0, %v33_v53  ;;  %v417_v14 = vpop.permute.xlu1 %416 }
  0xfc   :  { %v422_v23 = vpop.permute.xlu1 %421 }
 0x100   :  { %v427_v24 = vpop.permute.xlu1 %426 }
 0x104   :  { %v432_v31 = vpop.permute.xlu1 %431 }
 0x108   :  { %v455_v47 = vpop.permute.xlu1 %454 }
 0x1b3   :  { %v506_v55 = vpop.f32.mrf.mxu0 }
 0x1b4   :  { %v275_v62 = vadd.f32 %v506_v55, %v174_v56 }
 0x1b5   :  { %v269_v57 = vpop.f32.mrf.mxu0 }
 0x1b6   :  { %v270_v1 = vadd.f32 %v269_v57, %v169_v0 }
 0x1b7   :  { %v509_v59 = vpop.f32.mrf.mxu0 }
 0x1b8   :  { %v285_v60 = vadd.f32 %v509_v59, %v184_v58 }
 0x1b9   :  { %v279_v61 = vpop.f32.mrf.mxu0 }
 0x1ba   :  { %553 = vtanh.f32 %v285_v60  ;;  %v280_v63 = vadd.f32 %v279_v61, %v179_v19 }
 0x1bc   :  { %555 = vtanh.f32 %v280_v63 }
 0x1bd   :  { %557 = vtanh.f32 %v275_v62 }
 0x1be   :  { %559 = vtanh.f32 %v270_v1 }
 0x1c7   :  { %v554_v2 = vpop.eup %553 }
 0x1c8   :  { %510 = vmatprep.subr.mxu0 %v554_v2  ;;  %524 = vmatprep.subr.mxu1 %v554_v2 }
 0x1c9   :  { %v556_v3 = vpop.eup %555  ;;  %511 = vmatpush3.msra.mxu0 %v554_v2  ;;  %528 = vmatpush3.msra.mxu1 %v554_v2 }
 0x1ca   :  { %512 = vmatprep.subr.mxu0 %v556_v3  ;;  %525 = vmatprep.subr.mxu1 %v556_v3  ;;  %v558_v4 = vpop.eup %557 }
 0x1cb   :  { %513 = vmatpush3.msra.mxu0 %v556_v3  ;;  %529 = vmatpush3.msra.mxu1 %v556_v3  ;;  %v560_v5 = vpop.eup %559 }
 0x1cc   :  { %514 = vmatprep.subr.mxu0 %v558_v4  ;;  %526 = vmatprep.subr.mxu1 %v558_v4 }
 0x1cd   :  { %515 = vmatpush3.msra.mxu0 %v558_v4  ;;  %530 = vmatpush3.msra.mxu1 %v558_v4 }
 0x1ce   :  { %516 = vmatprep.subr.mxu0 %v560_v5  ;;  %527 = vmatprep.subr.mxu1 %v560_v5 }
 0x1cf   :  { %517 = vmatpush3.msra.mxu0 %v560_v5  ;;  %531 = vmatpush3.msra.mxu1 %v560_v5 }
 0x1d0   :  { %519 = vmatmul.mubr.msk.f32.vlgmr.msra.gmra.mxu0 %vm312_vm0, %v34_v6  ;;  %522 = vmatmul.mubr.msk.f32.vlgmr.msra.gmra.mxu1 %vm312_vm0, %v36_v7 }
 0x290   :  { %v520_v12 = vpop.f32.mrf.mxu0  ;;  %v523_v13 = vpop.f32.mrf.mxu1 }
 0x291   :  { %v397_v15 = vadd.f32 %v520_v12, %v300_v9  ;;  %v407_v16 = vadd.f32 %v523_v13, %v310_v11 }
 0x292   :  { %v391_v17 = vpop.f32.mrf.mxu0  ;;  %v401_v18 = vpop.f32.mrf.mxu1 }
 0x293   :  { %561 = vtanh.f32 %v397_v15  ;;  %v392_v20 = vadd.f32 %v391_v17, %v295_v8  ;;  %v402_v22 = vadd.f32 %v401_v18, %v305_v10 }
 0x294   :  { %563 = vtanh.f32 %v407_v16 }
 0x295   :  { %565 = vtanh.f32 %v392_v20 }
 0x296   :  { %567 = vtanh.f32 %v402_v22 }
 0x2a0   :  { %v562_v25 = vpop.eup %561 }
 0x2a1   :  { %v564_v26 = vpop.eup %563  ;;  %v435_v27 = vmul.f32 %v562_v25, %v422_v23 }
 0x2a2   :  { %v566_v28 = vpop.eup %565  ;;  %v437_v34 = vmul.f32 %v564_v26, %v432_v31 }
 0x2a3   :  { %v568_v29 = vpop.eup %567  ;;  %v434_v30 = vmul.f32 %v566_v28, %v417_v14  ;;  %v440_v33 = vsel %vm438_vm1, %v435_v27, 0.0 }
 0x2a4   :  { %v436_v32 = vmul.f32 %v568_v29, %v427_v24  ;;  %v444_v39 = vsel %vm438_vm1, %v437_v34, 0.0 }
 0x2a5   :  { %v439_v35 = vsel %vm438_vm1, %v434_v30, 0.0 }
 0x2a6   :  { %v441_v36 = vadd.f32 %v440_v33, %v439_v35  ;;  %v442_v37 = vsel %vm438_vm1, %v436_v32, 0.0 }
 0x2a8   :  { %v443_v38 = vadd.f32 %v442_v37, %v441_v36 }
 0x2aa   :  { %v445_v40 = vadd.f32 %v444_v39, %v443_v38 }
 0x2ac   :  { %v446_v41 = vrot.slane %v445_v40, 4 }
 0x2ae   :  { %v447_v42 = vadd.f32 %v446_v41, %v445_v40 }
 0x2b0   :  { %v448_v43 = vrot.slane %v447_v42, 2 }
 0x2b2   :  { %v449_v44 = vadd.f32 %v448_v43, %v447_v42 }
 0x2b4   :  { %v450_v45 = vrot.slane %v449_v44, 1 }
 0x2b6   :  { %v451_v46 = vadd.f32 %v450_v45, %v449_v44 }
 0x2b8   :  { %v457_v48 = vadd.f32 %v455_v47, %v451_v46 }
 0x2ba   :  { %459 = vst.msk [vmem:[#allocation5] sm:$0x1] %vm458_vm2, %v457_v48 }
 0x2bb   :  { %600 = shalt.err (!%p597_p9)
}
 0x2bc   :  { %469 = dma.vmem_to_hbm [thread:$0]  %s467_s1, 16, %s679_s2, [#allocation4]  }
 0x2bd   :  { %611 = dma.done.wait [#allocation4], 16  }
 0x2be   :  { %612 = vsyncadd [#allocation4], 4294967280 }
 0x2bf   :  { %473 = vsyncpa [#allocation3], 1 }
 0x2c0   :  { %474 = vsyncpa [#allocation4], 1 }

</bundles_post_ra>
